<compile_context>
chip_gen: v7x
topology: tpu7x:2x2x1
jax: 0.10.0
libtpu: 0.0.40
codegen_flags: <defaults>
</compile_context>

<pallas_src>
import functools

import jax
import jax.numpy as jnp
import numpy as np
from jax.experimental import pallas as pl
from jax.experimental.pallas import tpu as pltpu


# ----------------------------------------------------------------------------
# Pallas kernel: fused channel attention for a block of nb batch images
# ----------------------------------------------------------------------------
def _ca_kernel(x_ref, w1t_ref, b1_ref, w2_ref, b2_ref, o_ref, *, inv_hw):
    # x_ref/o_ref: (nb, C, HWp)  w1t_ref: (C, CR)  b1_ref: (1, CR)
    # w2_ref: (C, CR)            b2_ref: (C, 1)
    # Global average pool over the lane-dense HW axis (accumulate in f32).
    # inv_hw is 1/(H*W) of the *unpadded* image, so zero-padded lanes are
    # harmless.
    avg = jnp.sum(x_ref[...].astype(jnp.float32), axis=2,
                  keepdims=True) * inv_hw                       # (nb, C, 1)

    # Squeeze 1x1 conv + ReLU: VPU lane-broadcast multiply + XLU sublane
    # reduce (deliberately NOT jnp.dot -> stays off the MXU).
    hid = jnp.sum(w1t_ref[...][None, :, :] * avg, axis=1,
                  keepdims=True)                                # (nb, 1, CR)
    hid = jnp.maximum(hid + b1_ref[...][None, :, :], 0.0)

    # Excite 1x1 conv + sigmoid: VPU sublane-broadcast multiply + XLU lane
    # reduce (also off-MXU).
    y = jnp.sum(w2_ref[...][None, :, :] * hid, axis=2,
                keepdims=True)                                  # (nb, C, 1)
    y = jax.nn.sigmoid(y + b2_ref[...][None, :, :])

    # Per-channel scale.  Re-index x_ref here (rather than holding the f32
    # pooled tile live across the SE math) so the register pressure of the
    # dominant elementwise stage stays flat at large blocks; the multiply
    # runs in x's native dtype (bf16 inputs stay bf16).
    o_ref[...] = (x_ref[...] * y.astype(x_ref.dtype)).astype(o_ref.dtype)


# ----------------------------------------------------------------------------
# Block-size heuristic
# ----------------------------------------------------------------------------
def _choose_batch_block(n, c, hw_pad, itemsize):
    per_image_hbm = c * hw_pad * itemsize
    target = 2 << 20                       # ~2 MiB x tile: near HBM roofline
    nb = max(1, min(n, target // max(per_image_hbm, 1)))
    if n > 1:
        # Keep >=2 grid steps so the "parallel" axis can feed both v7x TCs.
        nb = min(nb, pl.cdiv(n, 2))
    # Double-buffered in + out (budgeted at f32 width) must fit scoped VMEM
    # with headroom; 24 MiB keeps us under v7x's 32 MiB default.
    vmem_budget = 24 << 20
    while nb > 1 and 4 * nb * c * hw_pad * 4 > vmem_budget:
        nb -= 1
    return nb


# ----------------------------------------------------------------------------
# Wrapper
# ----------------------------------------------------------------------------
def ca_layer(x, w1, b1, w2, b2):
    """Channel attention.

    x : (N, C, H, W)  (NCHW, same as the PyTorch module)
    w1: (C//r, C)     weight of Conv2d(C, C//r, 1)  (squeezed from (C//r,C,1,1))
    b1: (C//r,)
    w2: (C, C//r)     weight of Conv2d(C//r, C, 1)
    b2: (C,)
    returns x * sigmoid(conv2(relu(conv1(avgpool(x)))))
    """
    n, c, h, w = x.shape
    hw = h * w
    cr = w1.shape[0]

    # Lane-dense HW axis: pad to a multiple of 128 so stores are never ragged.
    hw_pad = pl.cdiv(hw, 128) * 128
    nb = _choose_batch_block(n, c, hw_pad, x.dtype.itemsize)
    num_blocks = pl.cdiv(n, nb)
    n_pad = num_blocks * nb

    xf = x.reshape(n, c, hw)                     # channels on sublanes
    if n_pad != n or hw_pad != hw:
        xf = jnp.pad(xf, ((0, n_pad - n), (0, 0), (0, hw_pad - hw)))

    w1_t = w1.T                                  # (C, CR): no in-kernel transpose
    b1_r = b1.reshape(1, cr)
    b2_c = b2.reshape(c, 1)

    out = pl.pallas_call(
        functools.partial(_ca_kernel, inv_hw=1.0 / hw),
        out_shape=jax.ShapeDtypeStruct((n_pad, c, hw_pad), x.dtype),
        grid=(num_blocks,),
        in_specs=[
            pl.BlockSpec((nb, c, hw_pad), lambda i: (i, 0, 0)),
            pl.BlockSpec((c, cr), lambda i: (0, 0)),
            pl.BlockSpec((1, cr), lambda i: (0, 0)),
            pl.BlockSpec((c, cr), lambda i: (0, 0)),
            pl.BlockSpec((c, 1), lambda i: (0, 0)),
        ],
        out_specs=pl.BlockSpec((nb, c, hw_pad), lambda i: (i, 0, 0)),
        compiler_params=pltpu.CompilerParams(
            dimension_semantics=("parallel",),
            vmem_limit_bytes=32 * 1024 * 1024),
    )(xf, w1_t, b1_r, w2, b2_c)

    if n_pad != n or hw_pad != hw:
        out = out[:n, :, :hw]
    return out.reshape(n, c, h, w)


# ----------------------------------------------------------------------------
# Pure-JAX reference (matches the PyTorch forward)
# ----------------------------------------------------------------------------
def _ref_ca(x, w1, b1, w2, b2):
    avg = jnp.mean(x, axis=(2, 3))                   # (N, C)
    hid = jax.nn.relu(avg @ w1.T + b1)               # (N, C//r)
    y = jax.nn.sigmoid(hid @ w2.T + b2)              # (N, C)
    return x * y[:, :, None, None]


# ----------------------------------------------------------------------------
if __name__ == "__main__":
    # CALayer(channel=64, reduction=16)  -- module defaults
    N, C, H, W = 4, 64, 16, 16
    REDUCTION = 16
    CR = C // REDUCTION

    key = jax.random.PRNGKey(0)
    kx, k1, k2, k3, k4 = jax.random.split(key, 5)
    x = jax.random.normal(kx, (N, C, H, W), jnp.float32)        # NCHW
    w1 = jax.random.normal(k1, (CR, C), jnp.float32) / np.sqrt(C)
    b1 = 0.01 * jax.random.normal(k2, (CR,), jnp.float32)
    w2 = jax.random.normal(k3, (C, CR), jnp.float32) / np.sqrt(CR)
    b2 = 0.01 * jax.random.normal(k4, (C,), jnp.float32)

    out = jax.jit(ca_layer)(x, w1, b1, w2, b2)
    out = jax.block_until_ready(out)

    ref = _ref_ca(x, w1, b1, w2, b2)
    np.testing.assert_allclose(np.asarray(out), np.asarray(ref),
                               rtol=1e-4, atol=1e-4)
    assert out.shape == (N, C, H, W)
    assert bool(jnp.all(jnp.isfinite(out)))

    print("KERNEL_OK")
</pallas_src>

<mosaic_0001>
module attributes {stable_mosaic.version = 11 : i64} {
  func.func @_ca_kernel(%arg0: i32, %arg1: memref<2x64x256xf32, #tpu.memory_space<vmem>>, %arg2: memref<64x4xf32, #tpu.memory_space<vmem>>, %arg3: memref<1x4xf32, #tpu.memory_space<vmem>>, %arg4: memref<64x4xf32, #tpu.memory_space<vmem>>, %arg5: memref<64x1xf32, #tpu.memory_space<vmem>>, %arg6: memref<2x64x256xf32, #tpu.memory_space<vmem>>) attributes {dimension_semantics = [#tpu.dimension_semantics<parallel>], iteration_bounds = array<i64: 2>, scalar_prefetch = 0 : i64, scratch_operands = 0 : i64, tpu.core_type = #tpu.core_type<tc>, window_params = [{transform_indices = @transform_0, window_bounds = array<i64: 2, 64, 256>}, {pipeline_mode = #tpu.pipeline_mode<synchronous>, transform_indices = @transform_1, window_bounds = array<i64: 64, 4>}, {pipeline_mode = #tpu.pipeline_mode<synchronous>, transform_indices = @transform_2, window_bounds = array<i64: 1, 4>}, {pipeline_mode = #tpu.pipeline_mode<synchronous>, transform_indices = @transform_3, window_bounds = array<i64: 64, 4>}, {pipeline_mode = #tpu.pipeline_mode<synchronous>, transform_indices = @transform_4, window_bounds = array<i64: 64, 1>}, {transform_indices = @transform_5, window_bounds = array<i64: 2, 64, 256>}]} {
    %c0 = arith.constant 0 : index
    %c0_0 = arith.constant 0 : index
    %c0_1 = arith.constant 0 : index
    %0 = vector.load %arg1[%c0, %c0_0, %c0_1] : memref<2x64x256xf32, #tpu.memory_space<vmem>>, vector<2x64x256xf32>
    %cst = arith.constant dense<0.000000e+00> : vector<2x64xf32>
    %1 = vector.multi_reduction <add>, %0, %cst [2] : vector<2x64x256xf32> to vector<2x64xf32>
    %2 = vector.shape_cast %1 : vector<2x64xf32> to vector<2x64x1xf32>
    %cst_2 = arith.constant 3.906250e-03 : f32
    %3 = vector.broadcast %cst_2 : f32 to vector<2x64x1xf32>
    %4 = arith.mulf %2, %3 : vector<2x64x1xf32>
    %c0_3 = arith.constant 0 : index
    %c0_4 = arith.constant 0 : index
    %5 = vector.load %arg2[%c0_3, %c0_4] : memref<64x4xf32, #tpu.memory_space<vmem>>, vector<64x4xf32>
    %6 = vector.shape_cast %5 : vector<64x4xf32> to vector<1x64x4xf32>
    %7 = vector.broadcast %6 : vector<1x64x4xf32> to vector<2x64x4xf32>
    %8 = vector.broadcast %4 : vector<2x64x1xf32> to vector<2x64x4xf32>
    %9 = arith.mulf %7, %8 : vector<2x64x4xf32>
    %cst_5 = arith.constant dense<0.000000e+00> : vector<2x4xf32>
    %10 = vector.multi_reduction <add>, %9, %cst_5 [1] : vector<2x64x4xf32> to vector<2x4xf32>
    %11 = vector.shape_cast %10 : vector<2x4xf32> to vector<2x1x4xf32>
    %c0_6 = arith.constant 0 : index
    %c0_7 = arith.constant 0 : index
    %12 = vector.load %arg3[%c0_6, %c0_7] : memref<1x4xf32, #tpu.memory_space<vmem>>, vector<1x4xf32>
    %13 = vector.shape_cast %12 : vector<1x4xf32> to vector<1x1x4xf32>
    %14 = vector.broadcast %13 : vector<1x1x4xf32> to vector<2x1x4xf32>
    %15 = arith.addf %11, %14 : vector<2x1x4xf32>
    %cst_8 = arith.constant 0.000000e+00 : f32
    %16 = vector.broadcast %cst_8 : f32 to vector<2x1x4xf32>
    %17 = arith.maximumf %15, %16 : vector<2x1x4xf32>
    %c0_9 = arith.constant 0 : index
    %c0_10 = arith.constant 0 : index
    %18 = vector.load %arg4[%c0_9, %c0_10] : memref<64x4xf32, #tpu.memory_space<vmem>>, vector<64x4xf32>
    %19 = vector.shape_cast %18 : vector<64x4xf32> to vector<1x64x4xf32>
    %20 = vector.broadcast %19 : vector<1x64x4xf32> to vector<2x64x4xf32>
    %21 = vector.broadcast %17 : vector<2x1x4xf32> to vector<2x64x4xf32>
    %22 = arith.mulf %20, %21 : vector<2x64x4xf32>
    %cst_11 = arith.constant dense<0.000000e+00> : vector<2x64xf32>
    %23 = vector.multi_reduction <add>, %22, %cst_11 [2] : vector<2x64x4xf32> to vector<2x64xf32>
    %24 = vector.shape_cast %23 : vector<2x64xf32> to vector<2x64x1xf32>
    %c0_12 = arith.constant 0 : index
    %c0_13 = arith.constant 0 : index
    %25 = vector.load %arg5[%c0_12, %c0_13] : memref<64x1xf32, #tpu.memory_space<vmem>>, vector<64x1xf32>
    %26 = vector.shape_cast %25 : vector<64x1xf32> to vector<1x64x1xf32>
    %27 = vector.broadcast %26 : vector<1x64x1xf32> to vector<2x64x1xf32>
    %28 = arith.addf %24, %27 : vector<2x64x1xf32>
    %29 = arith.negf %28 : vector<2x64x1xf32>
    %30 = math.exp %29 : vector<2x64x1xf32>
    %cst_14 = arith.constant 1.000000e+00 : f32
    %31 = vector.broadcast %cst_14 : f32 to vector<2x64x1xf32>
    %32 = arith.addf %31, %30 : vector<2x64x1xf32>
    %33 = arith.divf %31, %32 : vector<2x64x1xf32>
    %c0_15 = arith.constant 0 : index
    %c0_16 = arith.constant 0 : index
    %c0_17 = arith.constant 0 : index
    %34 = vector.load %arg1[%c0_15, %c0_16, %c0_17] : memref<2x64x256xf32, #tpu.memory_space<vmem>>, vector<2x64x256xf32>
    %35 = vector.broadcast %33 : vector<2x64x1xf32> to vector<2x64x256xf32>
    %36 = arith.mulf %34, %35 : vector<2x64x256xf32>
    %c0_18 = arith.constant 0 : index
    %c0_19 = arith.constant 0 : index
    %c0_20 = arith.constant 0 : index
    %37 = vector.load %arg6[%c0_18, %c0_19, %c0_20] : memref<2x64x256xf32, #tpu.memory_space<vmem>>, vector<2x64x256xf32>
    tpu.vector_store %arg6[%c0_18, %c0_19, %c0_20], %36 {strides = array<i32>} : memref<2x64x256xf32, #tpu.memory_space<vmem>>, vector<2x64x256xf32>,
    return
  }
  func.func @transform_0(%arg0: i32) -> (i32, i32, i32) {
    %c0_i32 = arith.constant 0 : i32
    %c0_i32_0 = arith.constant 0 : i32
    %c0_i32_1 = arith.constant 0 : i32
    return %arg0, %c0_i32, %c0_i32_0 : i32, i32, i32
  }
  func.func @transform_1(%arg0: i32) -> (i32, i32) {
    %c0_i32 = arith.constant 0 : i32
    %c0_i32_0 = arith.constant 0 : i32
    %c0_i32_1 = arith.constant 0 : i32
    return %c0_i32, %c0_i32_0 : i32, i32
  }
  func.func @transform_2(%arg0: i32) -> (i32, i32) {
    %c0_i32 = arith.constant 0 : i32
    %c0_i32_0 = arith.constant 0 : i32
    %c0_i32_1 = arith.constant 0 : i32
    return %c0_i32, %c0_i32_0 : i32, i32
  }
  func.func @transform_3(%arg0: i32) -> (i32, i32) {
    %c0_i32 = arith.constant 0 : i32
    %c0_i32_0 = arith.constant 0 : i32
    %c0_i32_1 = arith.constant 0 : i32
    return %c0_i32, %c0_i32_0 : i32, i32
  }
  func.func @transform_4(%arg0: i32) -> (i32, i32) {
    %c0_i32 = arith.constant 0 : i32
    %c0_i32_0 = arith.constant 0 : i32
    %c0_i32_1 = arith.constant 0 : i32
    return %c0_i32, %c0_i32_0 : i32, i32
  }
  func.func @transform_5(%arg0: i32) -> (i32, i32, i32) {
    %c0_i32 = arith.constant 0 : i32
    %c0_i32_0 = arith.constant 0 : i32
    %c0_i32_1 = arith.constant 0 : i32
    return %arg0, %c0_i32, %c0_i32_0 : i32, i32, i32
  }
}

</mosaic_0001>

<bundles_post_ra>
// kernel: ca_layer.1
= control target key start
LH: loop header
LB: loop body
LE: loop exit
PB: predicated region body
PF: predicated region fallthrough
CT: control target
= control target key end

     0   :  { %s948_s18 = smov 0   ;;  %s1279_s0 = inlined_call_operand.vmem [shape: f32[4,64,256], index: 0, kind: input, shape index: {}]   ;;  %s1280_s1 = inlined_call_operand.vmem [shape: f32[64,4], index: 1, kind: input, shape index: {}]   ;;  %s1281_s2 = inlined_call_operand.vmem [shape: f32[1,4], index: 2, kind: input, shape index: {}]   ;;  %s1282_s3 = inlined_call_operand.vmem [shape: f32[64,4], index: 3, kind: input, shape index: {}]   ;;  %s1283_s4 = inlined_call_operand.vmem [shape: f32[64,1], index: 4, kind: input, shape index: {}]   ;;  %s1284_s5 = inlined_call_operand.vmem [shape: f32[4,64,256], index: 5, kind: output, shape index: {}]  }
   0x1 LB: > { %s803_s19 = sadd.s32 4294967295, %s915_s18   ;;  %p807_p0 = scmp.ge.s32.totalorder %s915_s18, 1  ;;  %s915_s18 = sphi %s948_s18, %s15_s18  }
   0x2   : > { %p189_p1 = scmp.lt.s32.totalorder %s915_s18, 3 }
   0x4   : > { %p190_p2 = pnand %p807_p0, %p189_p1 }
   0x5   : > { %s808_s20 = sshll.u32 (!%p190_p2), %s803_s19, 1  ;;  %v329_v51 = vld [vmem:[%s1280_s1] sm:$0xff] (!%p190_p2)  ;;  %vm353_vm0 = vcmask (!%p190_p2), 31744   ;;  %v330_v56 = vld [vmem:[%s1280_s1 + $0x8] sm:$0xff] (!%p190_p2) }
   0x6   : > { %193 = sbr.rel (%p190_p2) target bundleno = 559 (0x22f), region = 40  ;;  %p220_p3 = scmp.lt.s32.totalorder (!%p190_p2), %s808_s20, 3 }
   0xd   : > { %s1286_s20 = smov (!%p220_p3, %s808_s20), 3 }
   0xe   : > { %s832_s21 = sshll.u32 %s1286_s20, 7 }
   0xf   : > { %s964_s24 = scalar_lea.vmem %s1279_s0, %s832_s21  ;;  %s1210_s8 = scalar_lea.vmem %s1284_s5, %s832_s21 }
  0x10   : > { %v967_v0 = vld [vmem:[%s964_s24] sm:$0xff]  ;;  %v970_v1 = vld [vmem:[%s964_s24 + $0x8] sm:$0xff]  ;;  %v973_v2 = vld [vmem:[%s964_s24 + $0x10] sm:$0xff] }
  0x11   : > { %v265_v3 = vadd.f32 %v970_v1, %v967_v0  ;;  %v978_v4 = vld [vmem:[%s964_s24 + $0x18] sm:$0xff]  ;;  %v981_v5 = vld [vmem:[%s964_s24 + $0x80] sm:$0xff]  ;;  %v984_v6 = vld [vmem:[%s964_s24 + $0x88] sm:$0xff] }
  0x12   : > { %v289_v7 = vadd.f32 %v984_v6, %v981_v5  ;;  %v989_v8 = vld [vmem:[%s964_s24 + $0x90] sm:$0xff]  ;;  %v268_v9 = vadd.f32 %v978_v4, %v973_v2  ;;  %v994_v10 = vld [vmem:[%s964_s24 + $0x98] sm:$0xff]  ;;  %v997_v11 = vld [vmem:[%s964_s24 + $0x20] sm:$0xff] }
  0x13   : > { %266 = vadd.xlane.f32.xlu0 %v265_v3  ;;  %v1000_v12 = vld [vmem:[%s964_s24 + $0x28] sm:$0xff]  ;;  %v292_v13 = vadd.f32 %v994_v10, %v989_v8  ;;  %v1005_v14 = vld [vmem:[%s964_s24 + $0xa0] sm:$0xff]  ;;  %v1013_v17 = vld [vmem:[%s964_s24 + $0x30] sm:$0xff] }
  0x14   : > { %290 = vadd.xlane.f32.xlu1 %v289_v7  ;;  %v1008_v15 = vld [vmem:[%s964_s24 + $0xa8] sm:$0xff]  ;;  %v271_v16 = vadd.f32 %v1000_v12, %v997_v11  ;;  %v1016_v18 = vld [vmem:[%s964_s24 + $0x38] sm:$0xff]  ;;  %v1021_v20 = vld [vmem:[%s964_s24 + $0xb0] sm:$0xff] }
  0x15   : > { %v295_v19 = vadd.f32 %v1008_v15, %v1005_v14  ;;  %v1024_v21 = vld [vmem:[%s964_s24 + $0xb8] sm:$0xff]  ;;  %v274_v22 = vadd.f32 %v1016_v18, %v1013_v17  ;;  %v1029_v23 = vld [vmem:[%s964_s24 + $0x40] sm:$0xff]  ;;  %v1032_v24 = vld [vmem:[%s964_s24 + $0x48] sm:$0xff] }
  0x16   : > { %v298_v25 = vadd.f32 %v1024_v21, %v1021_v20  ;;  %v1037_v26 = vld [vmem:[%s964_s24 + $0xc0] sm:$0xff]  ;;  %v1040_v27 = vld [vmem:[%s964_s24 + $0xc8] sm:$0xff]  ;;  %v277_v28 = vadd.f32 %v1032_v24, %v1029_v23  ;;  %v1045_v29 = vld [vmem:[%s964_s24 + $0x50] sm:$0xff] }
  0x17   : > { %269 = vadd.xlane.f32.xlu0 %v268_v9  ;;  %v1048_v30 = vld [vmem:[%s964_s24 + $0x58] sm:$0xff]  ;;  %v301_v31 = vadd.f32 %v1040_v27, %v1037_v26  ;;  %v1053_v32 = vld [vmem:[%s964_s24 + $0xd0] sm:$0xff]  ;;  %v1061_v35 = vld [vmem:[%s964_s24 + $0x60] sm:$0xff] }
  0x18   : > { %293 = vadd.xlane.f32.xlu1 %v292_v13  ;;  %v1056_v33 = vld [vmem:[%s964_s24 + $0xd8] sm:$0xff]  ;;  %v280_v34 = vadd.f32 %v1048_v30, %v1045_v29  ;;  %v1064_v36 = vld [vmem:[%s964_s24 + $0x68] sm:$0xff]  ;;  %v1069_v38 = vld [vmem:[%s964_s24 + $0xe0] sm:$0xff] }
  0x19   : > { %v304_v37 = vadd.f32 %v1056_v33, %v1053_v32  ;;  %v1072_v39 = vld [vmem:[%s964_s24 + $0xe8] sm:$0xff]  ;;  %v283_v40 = vadd.f32 %v1064_v36, %v1061_v35  ;;  %v1077_v41 = vld [vmem:[%s964_s24 + $0x70] sm:$0xff]  ;;  %v1080_v42 = vld [vmem:[%s964_s24 + $0x78] sm:$0xff] }
  0x1a   : > { %v307_v43 = vadd.f32 %v1072_v39, %v1069_v38  ;;  %v1085_v44 = vld [vmem:[%s964_s24 + $0xf0] sm:$0xff]  ;;  %v1088_v45 = vld [vmem:[%s964_s24 + $0xf8] sm:$0xff]  ;;  %v286_v46 = vadd.f32 %v1080_v42, %v1077_v41 }
  0x1b   : > { %272 = vadd.xlane.f32.xlu0 %v271_v16  ;;  %v310_v47 = vadd.f32 %v1088_v45, %v1085_v44  ;;  %v331_v3 = vld [vmem:[%s1280_s1 + $0x10] sm:$0xff] }
  0x1c   : > { %296 = vadd.xlane.f32.xlu1 %v295_v19 }
  0x1f   : > { %275 = vadd.xlane.f32.xlu0 %v274_v22 }
  0x20   : > { %299 = vadd.xlane.f32.xlu1 %v298_v25 }
  0x23   : > { %278 = vadd.xlane.f32.xlu0 %v277_v28 }
  0x24   : > { %302 = vadd.xlane.f32.xlu1 %v301_v31 }
  0x27   : > { %281 = vadd.xlane.f32.xlu0 %v280_v34  ;;  %v332_v34 = vld [vmem:[%s1280_s1 + $0x18] sm:$0xff] }
  0x28   : > { %305 = vadd.xlane.f32.xlu1 %v304_v37 }
  0x2b   : > { %284 = vadd.xlane.f32.xlu0 %v283_v40 }
  0x2c   : > { %308 = vadd.xlane.f32.xlu1 %v307_v43 }
  0x2f   : > { %287 = vadd.xlane.f32.xlu0 %v286_v46 }
  0x30   : > { %311 = vadd.xlane.f32.xlu1 %v310_v47 }
  0xa0   : > { %v267_v48 = vpop.xlane.xlu0 %266 }
  0xa1   : > { %v291_v49 = vpop.xlane.xlu1 %290  ;;  %v313_v16 = vmul.f32 0.00390625, %v267_v48  ;;  %v333_v48 = vld [vmem:[%s1280_s1 + $0x20] sm:$0xff] }
  0xa2   : > { %v321_v50 = vmul.f32 0.00390625, %v291_v49 }
  0xa3   : > { %v337_v47 = vmul.f32 %v329_v51, %v313_v16 }
  0xa4   : > { %v270_v52 = vpop.xlane.xlu0 %269  ;;  %v345_v53 = vmul.f32 %v329_v51, %v321_v50 }
  0xa5   : > { %v294_v54 = vpop.xlane.xlu1 %293  ;;  %v314_v63 = vmul.f32 0.00390625, %v270_v52 }
  0xa6   : > { %v322_v55 = vmul.f32 0.00390625, %v294_v54  ;;  %v375_v57 = vsel %vm353_vm0, %v345_v53, 0.0 }
  0xa7   : > { %v338_v31 = vmul.f32 %v330_v56, %v314_v63 }
  0xa8   : > { %v273_v58 = vpop.xlane.xlu0 %272  ;;  %v346_v59 = vmul.f32 %v330_v56, %v322_v55 }
  0xa9   : > { %v297_v60 = vpop.xlane.xlu1 %296  ;;  %v315_v19 = vmul.f32 0.00390625, %v273_v58  ;;  %v355_v55 = vsel %vm353_vm0, %v338_v31, 0.0  ;;  %v334_v58 = vld [vmem:[%s1280_s1 + $0x28] sm:$0xff] }
  0xaa   : > { %v376_v61 = vsel %vm353_vm0, %v346_v59, 0.0  ;;  %v323_v62 = vmul.f32 0.00390625, %v297_v60  ;;  %v354_v60 = vsel %vm353_vm0, %v337_v47, 0.0 }
  0xab   : > { %v377_v7 = vadd.f32 %v376_v61, %v375_v57  ;;  %v339_v49 = vmul.f32 %v331_v3, %v315_v19 }
  0xac   : > { %v276_v9 = vpop.xlane.xlu0 %275  ;;  %v347_v13 = vmul.f32 %v331_v3, %v323_v62 }
  0xad   : > { %v300_v22 = vpop.xlane.xlu1 %299  ;;  %v316_v37 = vmul.f32 0.00390625, %v276_v9  ;;  %v357_v61 = vsel %vm353_vm0, %v339_v49, 0.0 }
  0xae   : > { %v378_v25 = vsel %vm353_vm0, %v347_v13, 0.0  ;;  %v324_v28 = vmul.f32 0.00390625, %v300_v22 }
  0xaf   : > { %v379_v40 = vadd.f32 %v378_v25, %v377_v7  ;;  %v340_v56 = vmul.f32 %v332_v34, %v316_v37  ;;  %v356_v7 = vadd.f32 %v355_v55, %v354_v60 }
  0xb0   : > { %v279_v43 = vpop.xlane.xlu0 %278  ;;  %v348_v46 = vmul.f32 %v332_v34, %v324_v28  ;;  %v335_v28 = vld [vmem:[%s1280_s1 + $0x30] sm:$0xff] }
  0xb1   : > { %v317_v50 = vmul.f32 0.00390625, %v279_v43  ;;  %v303_v52 = vpop.xlane.xlu1 %302  ;;  %v359_v16 = vsel %vm353_vm0, %v340_v56, 0.0  ;;  %v358_v25 = vadd.f32 %v357_v61, %v356_v7 }
  0xb2   : > { %v380_v53 = vsel %vm353_vm0, %v348_v46, 0.0  ;;  %v325_v54 = vmul.f32 0.00390625, %v303_v52 }
  0xb3   : > { %v381_v57 = vadd.f32 %v380_v53, %v379_v40  ;;  %v341_v62 = vmul.f32 %v333_v48, %v317_v50  ;;  %v360_v46 = vadd.f32 %v359_v16, %v358_v25 }
  0xb4   : > { %v282_v59 = vpop.xlane.xlu0 %281  ;;  %v349_v51 = vmul.f32 %v333_v48, %v325_v54  ;;  %v336_v54 = vld [vmem:[%s1280_s1 + $0x38] sm:$0xff] }
  0xb5   : > { %v318_v63 = vmul.f32 0.00390625, %v282_v59  ;;  %v306_v3 = vpop.xlane.xlu1 %305  ;;  %v361_v37 = vsel %vm353_vm0, %v341_v62, 0.0 }
  0xb6   : > { %v382_v9 = vsel %vm353_vm0, %v349_v51, 0.0  ;;  %v326_v13 = vmul.f32 0.00390625, %v306_v3  ;;  %v362_v53 = vadd.f32 %v361_v37, %v360_v46 }
  0xb7   : > { %v342_v19 = vmul.f32 %v334_v58, %v318_v63  ;;  %v383_v22 = vadd.f32 %v382_v9, %v381_v57 }
  0xb8   : > { %v285_v31 = vpop.xlane.xlu0 %284  ;;  %v350_v34 = vmul.f32 %v334_v58, %v326_v13 }
  0xb9   : > { %v319_v40 = vmul.f32 0.00390625, %v285_v31  ;;  %v309_v43 = vpop.xlane.xlu1 %308  ;;  %v363_v50 = vsel %vm353_vm0, %v342_v19, 0.0 }
  0xba   : > { %v384_v47 = vsel %vm353_vm0, %v350_v34, 0.0  ;;  %v327_v49 = vmul.f32 0.00390625, %v309_v43  ;;  %v364_v51 = vadd.f32 %v363_v50, %v362_v53  ;;  %v409_v34 = vlaneseq  ;;  %v396_v50 = vld [vmem:[%s1281_s2] sm:$0x1] }
  0xbb   : > { %v343_v52 = vmul.f32 %v335_v28, %v319_v40  ;;  %v385_v48 = vadd.f32 %v384_v47, %v383_v22 }
  0xbc   : > { %v288_v55 = vpop.xlane.xlu0 %287  ;;  %v351_v56 = vmul.f32 %v335_v28, %v327_v49  ;;  %v410_v47 = vshrl.u32 %v409_v34, 7 }
  0xbd   : > { %v365_v57 = vsel %vm353_vm0, %v343_v52, 0.0  ;;  %v320_v58 = vmul.f32 0.00390625, %v288_v55  ;;  %v312_v59 = vpop.xlane.xlu1 %311 }
  0xbe   : > { %v386_v60 = vsel %vm353_vm0, %v351_v56, 0.0  ;;  %v328_v61 = vmul.f32 0.00390625, %v312_v59  ;;  %v366_v3 = vadd.f32 %v365_v57, %v364_v51  ;;  %v411_v53 = vsub.s32 0, %v410_v47  ;;  %v402_v57 = vld [vmem:[%s1282_s3 + $0x8] sm:$0xff]  ;;  %v404_v51 = vld [vmem:[%s1282_s3 + $0x18] sm:$0xff] }
  0xbf   : > { %v344_v62 = vmul.f32 %v336_v54, %v320_v58  ;;  %v387_v63 = vadd.f32 %v386_v60, %v385_v48  ;;  %v401_v58 = vld [vmem:[%s1282_s3] sm:$0xff]  ;;  %v403_v60 = vld [vmem:[%s1282_s3 + $0x10] sm:$0xff] }
  0xc0   : > { %v352_v7 = vmul.f32 %v336_v54, %v328_v61 }
  0xc1   : > { %v367_v9 = vsel %vm353_vm0, %v344_v62, 0.0 }
  0xc2   : > { %v368_v13 = vadd.f32 %v367_v9, %v366_v3  ;;  %v388_v16 = vsel %vm353_vm0, %v352_v7, 0.0 }
  0xc3   : > { %v389_v19 = vadd.f32 %v388_v16, %v387_v63  ;;  %v406_v16 = vld [vmem:[%s1282_s3 + $0x28] sm:$0xff] }
  0xc4   : > { %v369_v22 = vrot.slane %v368_v13, 4 }
  0xc5   : > { %v390_v25 = vrot.slane %v389_v19, 4 }
  0xc6   : > { %v370_v28 = vadd.f32 %v369_v22, %v368_v13 }
  0xc7   : > { %v391_v31 = vadd.f32 %v390_v25, %v389_v19  ;;  %v405_v19 = vld [vmem:[%s1282_s3 + $0x20] sm:$0xff] }
  0xc8   : > { %v371_v37 = vrot.slane %v370_v28, 2 }
  0xc9   : > { %v392_v40 = vrot.slane %v391_v31, 2 }
  0xca   : > { %v372_v43 = vadd.f32 %v371_v37, %v370_v28  ;;  %v408_v37 = vld [vmem:[%s1282_s3 + $0x38] sm:$0xff] }
  0xcb   : > { %v393_v46 = vadd.f32 %v392_v40, %v391_v31  ;;  %v407_v40 = vld [vmem:[%s1282_s3 + $0x30] sm:$0xff] }
  0xcc   : > { %v373_v49 = vrot.slane %v372_v43, 1 }
  0xcd   : > { %v394_v48 = vrot.slane %v393_v46, 1 }
  0xce   : > { %v374_v52 = vadd.f32 %v373_v49, %v372_v43 }
  0xcf   : > { %v395_v56 = vadd.f32 %v394_v48, %v393_v46 }
  0xd0   : > { %v397_v54 = vadd.f32 %v396_v50, %v374_v52 }
  0xd1   : > { %v398_v63 = vadd.f32 %v396_v50, %v395_v56 }
  0xd2   : > { %v399_v55 = vmax.f32 %v397_v54, 0.0 }
  0xd3   : > { %v400_v22 = vmax.f32 %v398_v63, 0.0 }
  0xd4   : > { %v412_v59 = vrot.slane %v399_v55, %v411_v53 }
  0xd5   : > { %v416_v43 = vrot.slane %v400_v22, %v411_v53  ;;  %v917_v22 = vmov 0  }
  0xd6   : > { %v418_v61 = vmul.f32 %v412_v59, %v402_v57  ;;  %v417_v62 = vmul.f32 %v412_v59, %v401_v58  ;;  %v420_v9 = vmul.f32 %v412_v59, %v404_v51  ;;  %v419_v13 = vmul.f32 %v412_v59, %v403_v60  ;;  %844 = vset.pattern.permute.xlu1 %v917_v22 }
  0xd7   : > { %v422_v31 = vmul.f32 %v412_v59, %v406_v16  ;;  %v421_v34 = vmul.f32 %v412_v59, %v405_v19  ;;  %v424_v49 = vmul.f32 %v412_v59, %v408_v37  ;;  %v423_v50 = vmul.f32 %v412_v59, %v407_v40  ;;  %843 = vset.pattern.permute.xlu0 %v917_v22 }
  0xd8   : > { %v436_v3 = vsel %vm353_vm0, %v418_v61, 0.0  ;;  %v433_v7 = vsel %vm353_vm0, %v417_v62, 0.0  ;;  %v442_v25 = vsel %vm353_vm0, %v420_v9, 0.0  ;;  %v439_v28 = vsel %vm353_vm0, %v419_v13, 0.0 }
  0xd9   : > { %437 = vadd.xlane.f32.xlu1 %v436_v3  ;;  %434 = vadd.xlane.f32.xlu0 %v433_v7  ;;  %v448_v46 = vsel %vm353_vm0, %v422_v31, 0.0  ;;  %v445_v47 = vsel %vm353_vm0, %v421_v34, 0.0  ;;  %v454_v52 = vsel %vm353_vm0, %v424_v49, 0.0  ;;  %v451_v48 = vsel %vm353_vm0, %v423_v50, 0.0 }
  0xda   : > { %v426_v54 = vmul.f32 %v416_v43, %v402_v57  ;;  %v425_v55 = vmul.f32 %v416_v43, %v401_v58  ;;  %v428_v61 = vmul.f32 %v416_v43, %v404_v51  ;;  %v427_v62 = vmul.f32 %v416_v43, %v403_v60 }
  0xdb   : > { %v430_v3 = vmul.f32 %v416_v43, %v406_v16  ;;  %v429_v7 = vmul.f32 %v416_v43, %v405_v19  ;;  %v432_v9 = vmul.f32 %v416_v43, %v408_v37  ;;  %v431_v13 = vmul.f32 %v416_v43, %v407_v40  ;;  %v482_v16 = vld [vmem:[%s1283_s4 + $0x8] sm:$0xff]  ;;  %v481_v19 = vld [vmem:[%s1283_s4] sm:$0xff]  ;;  %v484_v37 = vld [vmem:[%s1283_s4 + $0x18] sm:$0xff] }
  0xdc   : > { %v460_v56 = vsel %vm353_vm0, %v426_v54, 0.0  ;;  %v457_v53 = vsel %vm353_vm0, %v425_v55, 0.0  ;;  %v466_v59 = vsel %vm353_vm0, %v428_v61, 0.0  ;;  %v463_v63 = vsel %vm353_vm0, %v427_v62, 0.0  ;;  %v483_v40 = vld [vmem:[%s1283_s4 + $0x10] sm:$0xff]  ;;  %v485_v54 = vld [vmem:[%s1283_s4 + $0x20] sm:$0xff] }
  0xdd   : > { %443 = vadd.xlane.f32.xlu1 %v442_v25  ;;  %440 = vadd.xlane.f32.xlu0 %v439_v28  ;;  %v472_v57 = vsel %vm353_vm0, %v430_v3, 0.0  ;;  %v469_v58 = vsel %vm353_vm0, %v429_v7, 0.0  ;;  %v478_v51 = vsel %vm353_vm0, %v432_v9, 0.0  ;;  %v475_v60 = vsel %vm353_vm0, %v431_v13, 0.0  ;;  %v1198_v7 = vld [vmem:[%s1283_s4 + $0x30] sm:$0xff] }
  0xe1   : > { %449 = vadd.xlane.f32.xlu1 %v448_v46  ;;  %446 = vadd.xlane.f32.xlu0 %v445_v47 }
  0xe5   : > { %455 = vadd.xlane.f32.xlu1 %v454_v52  ;;  %452 = vadd.xlane.f32.xlu0 %v451_v48  ;;  %v486_v48 = vld [vmem:[%s1283_s4 + $0x28] sm:$0xff] }
  0xe9   : > { %461 = vadd.xlane.f32.xlu1 %v460_v56  ;;  %458 = vadd.xlane.f32.xlu0 %v457_v53 }
  0xed   : > { %467 = vadd.xlane.f32.xlu1 %v466_v59  ;;  %464 = vadd.xlane.f32.xlu0 %v463_v63 }
  0xf1   : > { %473 = vadd.xlane.f32.xlu1 %v472_v57  ;;  %470 = vadd.xlane.f32.xlu0 %v469_v58 }
  0xf5   : > { %479 = vadd.xlane.f32.xlu1 %v478_v51  ;;  %476 = vadd.xlane.f32.xlu0 %v475_v60  ;;  %v488_v51 = vld [vmem:[%s1283_s4 + $0x38] sm:$0xff] }
 0x166   : > { %v438_v25 = vpop.xlane.xlu1 %437  ;;  %v435_v28 = vpop.xlane.xlu0 %434 }
 0x167   : > { %v490_v31 = vadd.f32 %v482_v16, %v438_v25  ;;  %v489_v34 = vadd.f32 %v481_v19, %v435_v28 }
 0x169   : > { %v815_v43 = vmul.f32 -1.442695, %v490_v31  ;;  %v814_v46 = vmul.f32 -1.442695, %v489_v34 }
 0x16a   : > { %v444_v47 = vpop.xlane.xlu1 %443  ;;  %v441_v49 = vpop.xlane.xlu0 %440 }
 0x16b   : > { %845 = vpow2.f32 %v815_v43  ;;  %v492_v50 = vadd.f32 %v484_v37, %v444_v47  ;;  %v491_v52 = vadd.f32 %v483_v40, %v441_v49 }
 0x16c   : > { %847 = vpow2.f32 %v814_v46 }
 0x16d   : > { %v817_v55 = vmul.f32 -1.442695, %v492_v50  ;;  %v816_v56 = vmul.f32 -1.442695, %v491_v52 }
 0x16e   : > { %v450_v53 = vpop.xlane.xlu1 %449  ;;  %v447_v61 = vpop.xlane.xlu0 %446 }
 0x16f   : > { %849 = vpow2.f32 %v817_v55  ;;  %v494_v62 = vadd.f32 %v486_v48, %v450_v53  ;;  %v493_v59 = vadd.f32 %v485_v54, %v447_v61 }
 0x170   : > { %851 = vpow2.f32 %v816_v56 }
 0x171   : > { %v819_v63 = vmul.f32 -1.442695, %v494_v62  ;;  %v818_v3 = vmul.f32 -1.442695, %v493_v59 }
 0x172   : > { %v456_v57 = vpop.xlane.xlu1 %455  ;;  %v453_v58 = vpop.xlane.xlu0 %452 }
 0x173   : > { %853 = vpow2.f32 %v818_v3  ;;  %v495_v9 = vadd.f32 %v1198_v7, %v453_v58  ;;  %v496_v43 = vadd.f32 %v488_v51, %v456_v57 }
 0x174   : > { %855 = vpow2.f32 %v819_v63 }
 0x175   : > { %v846_v13 = vpop.eup %845  ;;  %v820_v46 = vmul.f32 -1.442695, %v495_v9  ;;  %v821_v61 = vmul.f32 -1.442695, %v496_v43 }
 0x176   : > { %v848_v60 = vpop.eup %847  ;;  %v554_v22 = vadd.f32 1.0, %v846_v13  ;;  %v462_v25 = vpop.xlane.xlu1 %461 }
 0x177   : > { %v459_v28 = vpop.xlane.xlu0 %458  ;;  %v553_v31 = vadd.f32 1.0, %v848_v60  ;;  %v498_v34 = vadd.f32 %v482_v16, %v462_v25 }
 0x178   : > { %857 = vrcp.f32 %v554_v22  ;;  %v497_v62 = vadd.f32 %v481_v19, %v459_v28 }
 0x179   : > { %v850_v47 = vpop.eup %849  ;;  %859 = vrcp.f32 %v553_v31  ;;  %v823_v49 = vmul.f32 -1.442695, %v498_v34 }
 0x17a   : > { %v852_v50 = vpop.eup %851  ;;  %v468_v52 = vpop.xlane.xlu1 %467  ;;  %v556_v59 = vadd.f32 1.0, %v850_v47  ;;  %v822_v60 = vmul.f32 -1.442695, %v497_v62 }
 0x17b   : > { %v465_v55 = vpop.xlane.xlu0 %464  ;;  %v555_v56 = vadd.f32 1.0, %v852_v50  ;;  %861 = vpow2.f32 %v823_v49  ;;  %v500_v53 = vadd.f32 %v484_v37, %v468_v52 }
 0x17c   : > { %863 = vpow2.f32 %v820_v46  ;;  %v499_v9 = vadd.f32 %v483_v40, %v465_v55 }
 0x17d   : > { %865 = vrcp.f32 %v555_v56  ;;  %v825_v63 = vmul.f32 -1.442695, %v500_v53  ;;  %v854_v3 = vpop.eup %853 }
 0x17e   : > { %v474_v16 = vpop.xlane.xlu1 %473  ;;  %v856_v57 = vpop.eup %855  ;;  %v557_v22 = vadd.f32 1.0, %v854_v3  ;;  %v824_v19 = vmul.f32 -1.442695, %v499_v9 }
 0x17f   : > { %v471_v58 = vpop.xlane.xlu0 %470  ;;  %867 = vpow2.f32 %v825_v63  ;;  %v502_v13 = vadd.f32 %v486_v48, %v474_v16  ;;  %v558_v37 = vadd.f32 1.0, %v856_v57 }
 0x180   : > { %869 = vpow2.f32 %v821_v61  ;;  %v501_v28 = vadd.f32 %v485_v54, %v471_v58 }
 0x181   : > { %871 = vrcp.f32 %v556_v59  ;;  %v827_v25 = vmul.f32 -1.442695, %v502_v13 }
 0x182   : > { %v858_v31 = vpop.eup %857  ;;  %v480_v34 = vpop.xlane.xlu1 %479  ;;  %v826_v55 = vmul.f32 -1.442695, %v501_v28 }
 0x183   : > { %v860_v43 = vpop.eup %859  ;;  %873 = vpow2.f32 %v827_v25  ;;  %v504_v46 = vadd.f32 %v488_v51, %v480_v34  ;;  %608 = vperm.xlu1 %844, %v858_v31   ;;  %v477_v47 = vpop.xlane.xlu0 %476 }
 0x184   : > { %875 = vpow2.f32 %v822_v60  ;;  %603 = vperm.xlu0 %843, %v860_v43   ;;  %v503_v56 = vadd.f32 %v1198_v7, %v477_v47 }
 0x185   : > { %v862_v49 = vpop.eup %861  ;;  %877 = vrcp.f32 %v557_v22  ;;  %v829_v40 = vmul.f32 -1.442695, %v504_v46 }
 0x186   : > { %v864_v48 = vpop.eup %863  ;;  %879 = vrcp.f32 %v558_v37  ;;  %v562_v50 = vadd.f32 1.0, %v862_v49  ;;  %v828_v59 = vmul.f32 -1.442695, %v503_v56 }
 0x187   : > { %v866_v52 = vpop.eup %865  ;;  %881 = vpow2.f32 %v824_v19  ;;  %v559_v54 = vadd.f32 1.0, %v864_v48 }
 0x188   : > { %883 = vrcp.f32 %v562_v50  ;;  %613 = vperm.xlu1 %844, %v866_v52  }
 0x189   : > { %v868_v53 = vpop.eup %867  ;;  %885 = vpow2.f32 %v829_v40 }
 0x18a   : > { %v870_v51 = vpop.eup %869  ;;  %v564_v61 = vadd.f32 1.0, %v868_v53  ;;  %887 = vpow2.f32 %v826_v55 }
 0x18b   : > { %v872_v62 = vpop.eup %871  ;;  %v560_v3 = vadd.f32 1.0, %v870_v51 }
 0x18c   : > { %889 = vrcp.f32 %v564_v61  ;;  %618 = vperm.xlu1 %844, %v872_v62  }
 0x18d   : > { %v874_v63 = vpop.eup %873  ;;  %891 = vrcp.f32 %v559_v54 }
 0x18e   : > { %v876_v16 = vpop.eup %875  ;;  %v566_v58 = vadd.f32 1.0, %v874_v63  ;;  %893 = vpow2.f32 %v828_v59 }
 0x18f   : > { %v878_v57 = vpop.eup %877  ;;  %v561_v13 = vadd.f32 1.0, %v876_v16 }
 0x190   : > { %v880_v7 = vpop.eup %879  ;;  %895 = vrcp.f32 %v566_v58  ;;  %623 = vperm.xlu1 %844, %v878_v57  }
 0x191   : > { %v882_v9 = vpop.eup %881  ;;  %897 = vrcp.f32 %v560_v3 }
 0x192   : > { %v884_v60 = vpop.eup %883  ;;  %899 = vrcp.f32 %v561_v13  ;;  %v563_v37 = vadd.f32 1.0, %v882_v9 }
 0x193   : > { %v886_v22 = vpop.eup %885  ;;  %648 = vperm.xlu0 %843, %v884_v60  }
 0x194   : > { %v568_v25 = vadd.f32 1.0, %v886_v22  ;;  %628 = vperm.xlu1 %844, %v880_v7   ;;  %v888_v31 = vpop.eup %887 }
 0x195   : > { %v565_v28 = vadd.f32 1.0, %v888_v31 }
 0x196   : > { %v890_v34 = vpop.eup %889  ;;  %901 = vrcp.f32 %v568_v25 }
 0x197   : > { %v892_v43 = vpop.eup %891  ;;  %658 = vperm.xlu0 %843, %v890_v34   ;;  %903 = vrcp.f32 %v563_v37 }
 0x198   : > { %633 = vperm.xlu1 %844, %v892_v43   ;;  %v894_v19 = vpop.eup %893  ;;  %905 = vrcp.f32 %v565_v28 }
 0x199   : > { %v567_v49 = vadd.f32 1.0, %v894_v19 }
 0x19a   : > { %v896_v46 = vpop.eup %895 }
 0x19b   : > { %v898_v47 = vpop.eup %897  ;;  %668 = vperm.xlu0 %843, %v896_v46   ;;  %907 = vrcp.f32 %v567_v49 }
 0x19c   : > { %638 = vperm.xlu1 %844, %v898_v47   ;;  %v900_v40 = vpop.eup %899 }
 0x1a0   : > { %v902_v48 = vpop.eup %901  ;;  %643 = vperm.xlu1 %844, %v900_v40  }
 0x1a1   : > { %678 = vperm.xlu0 %843, %v902_v48   ;;  %v904_v50 = vpop.eup %903 }
 0x1a2   : > { %v906_v52 = vpop.eup %905 }
 0x1a4   : > { %653 = vperm.xlu1 %844, %v904_v50  }
 0x1a5   : > { %v908_v55 = vpop.eup %907 }
 0x1a8   : > { %663 = vperm.xlu1 %844, %v906_v52  }
 0x1ac   : > { %673 = vperm.xlu1 %844, %v908_v55  }
 0x202   : > { %v609_v56 = vpop.permute.xlu1 %608 }
 0x203   : > { %v683_v53 = vmul.f32 %v609_v56, %v973_v2  ;;  %v684_v54 = vmul.f32 %v609_v56, %v978_v4  ;;  %v604_v51 = vpop.permute.xlu0 %603 }
 0x204   : > { %v681_v61 = vmul.f32 %v604_v51, %v967_v0  ;;  %v682_v62 = vmul.f32 %v604_v51, %v970_v1 }
 0x205   : > { %715 = vst [vmem:[%s1210_s8 + $0x10] sm:$0xff] %v683_v53  ;;  %716 = vst [vmem:[%s1210_s8 + $0x18] sm:$0xff] %v684_v54 }
 0x206   : > { %713 = vst [vmem:[%s1210_s8] sm:$0xff] %v681_v61  ;;  %714 = vst [vmem:[%s1210_s8 + $0x8] sm:$0xff] %v682_v62 }
 0x207   : > { %v614_v59 = vpop.permute.xlu1 %613 }
 0x208   : > { %v685_v63 = vmul.f32 %v614_v59, %v997_v11  ;;  %v686_v2 = vmul.f32 %v614_v59, %v1000_v12 }
 0x20a   : > { %717 = vst [vmem:[%s1210_s8 + $0x20] sm:$0xff] %v685_v63  ;;  %718 = vst [vmem:[%s1210_s8 + $0x28] sm:$0xff] %v686_v2 }
 0x20b   : > { %v619_v4 = vpop.permute.xlu1 %618 }
 0x20c   : > { %v687_v3 = vmul.f32 %v619_v4, %v1013_v17  ;;  %v688_v0 = vmul.f32 %v619_v4, %v1016_v18 }
 0x20e   : > { %719 = vst [vmem:[%s1210_s8 + $0x30] sm:$0xff] %v687_v3  ;;  %720 = vst [vmem:[%s1210_s8 + $0x38] sm:$0xff] %v688_v0 }
 0x20f   : > { %v624_v1 = vpop.permute.xlu1 %623 }
 0x210   : > { %v689_v16 = vmul.f32 %v624_v1, %v1029_v23  ;;  %v690_v11 = vmul.f32 %v624_v1, %v1032_v24 }
 0x212   : > { %721 = vst [vmem:[%s1210_s8 + $0x40] sm:$0xff] %v689_v16  ;;  %722 = vst [vmem:[%s1210_s8 + $0x48] sm:$0xff] %v690_v11  ;;  %v649_v12 = vpop.permute.xlu0 %648 }
 0x213   : > { %v629_v58 = vpop.permute.xlu1 %628  ;;  %v699_v17 = vmul.f32 %v649_v12, %v989_v8  ;;  %v700_v18 = vmul.f32 %v649_v12, %v994_v10 }
 0x214   : > { %v691_v57 = vmul.f32 %v629_v58, %v1045_v29  ;;  %v692_v7 = vmul.f32 %v629_v58, %v1048_v30 }
 0x215   : > { %731 = vst [vmem:[%s1210_s8 + $0x90] sm:$0xff] %v699_v17  ;;  %732 = vst [vmem:[%s1210_s8 + $0x98] sm:$0xff] %v700_v18 }
 0x216   : > { %723 = vst [vmem:[%s1210_s8 + $0x50] sm:$0xff] %v691_v57  ;;  %724 = vst [vmem:[%s1210_s8 + $0x58] sm:$0xff] %v692_v7  ;;  %v659_v23 = vpop.permute.xlu0 %658 }
 0x217   : > { %v634_v24 = vpop.permute.xlu1 %633  ;;  %v703_v9 = vmul.f32 %v659_v23, %v1021_v20  ;;  %v704_v8 = vmul.f32 %v659_v23, %v1024_v21 }
 0x218   : > { %v693_v10 = vmul.f32 %v634_v24, %v1061_v35  ;;  %v694_v29 = vmul.f32 %v634_v24, %v1064_v36 }
 0x219   : > { %735 = vst [vmem:[%s1210_s8 + $0xb0] sm:$0xff] %v703_v9  ;;  %736 = vst [vmem:[%s1210_s8 + $0xb8] sm:$0xff] %v704_v8 }
 0x21a   : > { %725 = vst [vmem:[%s1210_s8 + $0x60] sm:$0xff] %v693_v10  ;;  %726 = vst [vmem:[%s1210_s8 + $0x68] sm:$0xff] %v694_v29  ;;  %v669_v30 = vpop.permute.xlu0 %668 }
 0x21b   : > { %v639_v13 = vpop.permute.xlu1 %638  ;;  %v707_v60 = vmul.f32 %v669_v30, %v1053_v32  ;;  %v708_v20 = vmul.f32 %v669_v30, %v1056_v33 }
 0x21c   : > { %v695_v21 = vmul.f32 %v639_v13, %v1077_v41  ;;  %v696_v35 = vmul.f32 %v639_v13, %v1080_v42 }
 0x21d   : > { %739 = vst [vmem:[%s1210_s8 + $0xd0] sm:$0xff] %v707_v60  ;;  %740 = vst [vmem:[%s1210_s8 + $0xd8] sm:$0xff] %v708_v20 }
 0x21e   : > { %727 = vst [vmem:[%s1210_s8 + $0x70] sm:$0xff] %v695_v21  ;;  %728 = vst [vmem:[%s1210_s8 + $0x78] sm:$0xff] %v696_v35 }
 0x21f   : > { %v644_v36 = vpop.permute.xlu1 %643 }
 0x220   : > { %v697_v22 = vmul.f32 %v644_v36, %v981_v5  ;;  %v698_v25 = vmul.f32 %v644_v36, %v984_v6  ;;  %v679_v32 = vpop.permute.xlu0 %678 }
 0x221   : > { %v711_v33 = vmul.f32 %v679_v32, %v1085_v44  ;;  %v712_v41 = vmul.f32 %v679_v32, %v1088_v45 }
 0x222   : > { %729 = vst [vmem:[%s1210_s8 + $0x80] sm:$0xff] %v697_v22  ;;  %730 = vst [vmem:[%s1210_s8 + $0x88] sm:$0xff] %v698_v25 }
 0x223   : > { %743 = vst [vmem:[%s1210_s8 + $0xf0] sm:$0xff] %v711_v33  ;;  %744 = vst [vmem:[%s1210_s8 + $0xf8] sm:$0xff] %v712_v41  ;;  %v654_v42 = vpop.permute.xlu1 %653 }
 0x224   : > { %v701_v31 = vmul.f32 %v654_v42, %v1005_v14  ;;  %v702_v5 = vmul.f32 %v654_v42, %v1008_v15 }
 0x226   : > { %733 = vst [vmem:[%s1210_s8 + $0xa0] sm:$0xff] %v701_v31  ;;  %734 = vst [vmem:[%s1210_s8 + $0xa8] sm:$0xff] %v702_v5 }
 0x227   : > { %v664_v6 = vpop.permute.xlu1 %663 }
 0x228   : > { %v705_v37 = vmul.f32 %v664_v6, %v1037_v26  ;;  %v706_v44 = vmul.f32 %v664_v6, %v1040_v27 }
 0x22a   : > { %737 = vst [vmem:[%s1210_s8 + $0xc0] sm:$0xff] %v705_v37  ;;  %738 = vst [vmem:[%s1210_s8 + $0xc8] sm:$0xff] %v706_v44 }
 0x22b   : > { %v674_v45 = vpop.permute.xlu1 %673 }
 0x22c   : > { %v709_v34 = vmul.f32 %v674_v45, %v1069_v38  ;;  %v710_v43 = vmul.f32 %v674_v45, %v1072_v39 }
 0x22e   : > { %741 = vst [vmem:[%s1210_s8 + $0xe0] sm:$0xff] %v709_v34  ;;  %742 = vst [vmem:[%s1210_s8 + $0xe8] sm:$0xff] %v710_v43 }
 0x22f PF: > { %s15_s18 = sadd.s32 1, %s915_s18  }
 0x230   : > { %p12_p4 = scmp.ge.s32.totalorder %s15_s18, 4  }
 0x232   :  { %14 = sbr.rel (!%p12_p4) target bundleno = 1 (0x1), region = 70 }

</bundles_post_ra>
